<compile_context>
chip_gen: v7x
topology: tpu7x:2x2x1
jax: 0.10.0
libtpu: 0.0.40
codegen_flags: <defaults>
</compile_context>

<pallas_src>
import functools

import jax
import jax.numpy as jnp
import numpy as np
from jax import lax
from jax.experimental import pallas as pl
from jax.experimental.pallas import tpu as pltpu

LANE = 128  # lane tile; also the left/right spatial zero-pad width (>= W+1)


def basic_block_kernel(x_ref, w1_ref, s1_ref, b1_ref, w2_ref, s2_ref, b2_ref,
                       out_ref, pad_ref, *, H, W):
    """Whole BasicBlock forward, full batch, one grid step.

    x_ref   : (BC, HW)        activations; BC = B*C rows, HW = H*W lanes
    w1_ref  : (3, 3, BC, BC)  block-diagonal conv1 tap weights
    s1_ref  : (BC, 1)         folded BN1 scale (per (batch, channel) row)
    b1_ref  : (BC, 1)         folded BN1 bias
    w2_ref  : (3, 3, BC, BC)  block-diagonal conv2 tap weights
    s2_ref  : (BC, 1)         folded BN2 scale
    b2_ref  : (BC, 1)         folded BN2 bias
    out_ref : (BC, HW)
    pad_ref : VMEM (BC, LANE + HW + LANE) scratch, reused by both convs
    """
    HW = H * W
    BC = x_ref.shape[0]

    # Zero ONLY the pad columns (the interior is fully overwritten below).
    pad_ref[:, :LANE] = jnp.zeros((BC, LANE), jnp.float32)
    pad_ref[:, LANE + HW:] = jnp.zeros((BC, LANE), jnp.float32)

    # Column masks killing horizontal wrap of the flattened-spatial windows.
    col = lax.broadcasted_iota(jnp.int32, (BC, HW), 1) % W
    ok_left = col >= 1           # reading x-1 is in-bounds
    ok_right = col <= W - 2      # reading x+1 is in-bounds

    def conv3x3(w_ref):
        # 3x3 / stride 1 / pad 1 conv over the padded scratch contents.
        acc = None
        for ky in range(3):
            for kx in range(3):
                dy, dx = ky - 1, kx - 1
                start = LANE + dy * W + dx          # static lane offset
                win = pad_ref[:, start:start + HW]  # (BC, HW) lane-shifted tap
                if dx == -1:
                    win = jnp.where(ok_left, win, 0.0)
                elif dx == 1:
                    win = jnp.where(ok_right, win, 0.0)
                t = jnp.dot(w_ref[ky, kx], win,
                            preferred_element_type=jnp.float32)
                acc = t if acc is None else acc + t
        return acc                                   # (BC, HW) f32

    x = x_ref[...]                                   # (BC, HW), un-relu'd

    # relu(x) -> padded scratch (lane-aligned dense store); conv1; BN1; relu
    pad_ref[:, LANE:LANE + HW] = jnp.maximum(x, 0.0)
    h1 = conv3x3(w1_ref) * s1_ref[...] + b1_ref[...]
    h1 = jnp.maximum(h1, 0.0)

    # conv2 (reuse scratch; interior overwritten); BN2; residual add.
    pad_ref[:, LANE:LANE + HW] = h1
    out = conv3x3(w2_ref) * s2_ref[...] + b2_ref[...] + x
    out_ref[...] = out.astype(out_ref.dtype)


def basic_block_pallas(x_nchw, w1_oihw, s1, b1, w2_oihw, s2, b2):
    """x_nchw: (B, C, H, W); w*: OIHW (Cout, Cin, 3, 3); s*/b*: (C,) folded BN."""
    B, C, H, W = x_nchw.shape
    Cmid, Cout = w1_oihw.shape[0], w2_oihw.shape[0]
    assert w1_oihw.shape[1] == C and w2_oihw.shape[1] == Cmid
    assert C == Cmid == Cout, "expansion=1, downsample=None => equal channels"
    assert W + 1 <= LANE, "width must fit inside the zero pad"
    HW = H * W
    BC = B * C

    # NCHW -> (B*C, H*W): spatial in lanes, no transpose needed.
    xf = x_nchw.reshape(BC, HW)

    # Block-diagonal per-tap weights: (3, 3, B*Cout, B*Cin).
    eye_b = jnp.eye(B, dtype=x_nchw.dtype)

    def block_diag_taps(w_oihw):
        w_t = jnp.transpose(w_oihw, (2, 3, 0, 1))           # (3, 3, Cout, Cin)
        wb = jnp.einsum('bd,hwoi->hwbodi', eye_b, w_t)
        return wb.reshape(3, 3, B * w_oihw.shape[0], B * w_oihw.shape[1])

    w1_blk = block_diag_taps(w1_oihw)
    w2_blk = block_diag_taps(w2_oihw)

    # Folded BN scale/bias tiled over batch -> one value per (b, c) row.
    s1_r = jnp.tile(s1, B).reshape(BC, 1)
    b1_r = jnp.tile(b1, B).reshape(BC, 1)
    s2_r = jnp.tile(s2, B).reshape(BC, 1)
    b2_r = jnp.tile(b2, B).reshape(BC, 1)

    kernel = functools.partial(basic_block_kernel, H=H, W=W)

    out_flat = pl.pallas_call(
        kernel,
        out_shape=jax.ShapeDtypeStruct((BC, HW), x_nchw.dtype),
        grid_spec=pltpu.PrefetchScalarGridSpec(
            num_scalar_prefetch=0,
            grid=(1,),          # whole batch in one step: tiny working set,
                                # per-step pipeline overhead would dominate.
            in_specs=[
                pl.BlockSpec((BC, HW), lambda i: (0, 0)),
                pl.BlockSpec((3, 3, BC, BC), lambda i: (0, 0, 0, 0)),
                pl.BlockSpec((BC, 1), lambda i: (0, 0)),
                pl.BlockSpec((BC, 1), lambda i: (0, 0)),
                pl.BlockSpec((3, 3, BC, BC), lambda i: (0, 0, 0, 0)),
                pl.BlockSpec((BC, 1), lambda i: (0, 0)),
                pl.BlockSpec((BC, 1), lambda i: (0, 0)),
            ],
            out_specs=pl.BlockSpec((BC, HW), lambda i: (0, 0)),
            scratch_shapes=[
                pltpu.VMEM((BC, LANE + HW + LANE), jnp.float32),
            ],
        ),
        compiler_params=pltpu.CompilerParams(
            dimension_semantics=("arbitrary",)),
    )(xf, w1_blk, s1_r, b1_r, w2_blk, s2_r, b2_r)

    return out_flat.reshape(B, C, H, W)


def reference_forward(x_nchw, w1_oihw, s1, b1, w2_oihw, s2, b2):
    """Pure-JAX reference of the same forward pass (for verification)."""
    dn = ('NCHW', 'OIHW', 'NCHW')
    prec = lax.Precision.HIGHEST
    identity = x_nchw
    h = jnp.maximum(x_nchw, 0.0)
    out = lax.conv_general_dilated(h, w1_oihw, (1, 1), 'SAME',
                                   dimension_numbers=dn, precision=prec)
    out = out * s1[None, :, None, None] + b1[None, :, None, None]
    out = jnp.maximum(out, 0.0)
    out = lax.conv_general_dilated(out, w2_oihw, (1, 1), 'SAME',
                                   dimension_numbers=dn, precision=prec)
    out = out * s2[None, :, None, None] + b2[None, :, None, None]
    return out + identity


def fold_bn(gamma, beta, mean, var, eps=1e-5):
    scale = gamma / jnp.sqrt(var + eps)
    bias = beta - mean * scale
    return scale, bias


if __name__ == "__main__":
    # BasicBlock(in_channels=4, out_channels=4, stride=1, downsample=None),
    # input x: NCHW (2, 4, 16, 16).
    B, C, H, W = 2, 4, 16, 16
    Cmid = C   # expansion == 1
    Cout = C

    key = jax.random.PRNGKey(0)
    (kx, kw1, kw2, kg1, kb1, km1, kv1,
     kg2, kb2, km2, kv2) = jax.random.split(key, 11)

    x_nchw = jax.random.normal(kx, (B, C, H, W), jnp.float32)

    # Conv weights in PyTorch OIHW layout.
    w1 = 0.1 * jax.random.normal(kw1, (Cmid, C, 3, 3), jnp.float32)
    w2 = 0.1 * jax.random.normal(kw2, (Cout, Cmid, 3, 3), jnp.float32)

    # BatchNorm (eval mode) parameters, folded to per-channel scale/bias.
    g1 = 1.0 + 0.1 * jax.random.normal(kg1, (Cmid,), jnp.float32)
    be1 = 0.1 * jax.random.normal(kb1, (Cmid,), jnp.float32)
    m1 = 0.1 * jax.random.normal(km1, (Cmid,), jnp.float32)
    v1 = jnp.abs(jax.random.normal(kv1, (Cmid,), jnp.float32)) + 0.5
    g2 = 1.0 + 0.1 * jax.random.normal(kg2, (Cout,), jnp.float32)
    be2 = 0.1 * jax.random.normal(kb2, (Cout,), jnp.float32)
    m2 = 0.1 * jax.random.normal(km2, (Cout,), jnp.float32)
    v2 = jnp.abs(jax.random.normal(kv2, (Cout,), jnp.float32)) + 0.5

    s1, b1 = fold_bn(g1, be1, m1, v1)
    s2, b2 = fold_bn(g2, be2, m2, v2)

    out_nchw = basic_block_pallas(x_nchw, w1, s1, b1, w2, s2, b2)
    out_nchw = jax.block_until_ready(out_nchw)

    ref_nchw = reference_forward(x_nchw, w1, s1, b1, w2, s2, b2)
    np.testing.assert_allclose(np.asarray(out_nchw), np.asarray(ref_nchw),
                               rtol=1e-3, atol=1e-3)
    assert out_nchw.shape == (B, C, H, W)

    print("KERNEL_OK")
</pallas_src>

<mosaic_0001>
module attributes {stable_mosaic.version = 11 : i64} {
  func.func @basic_block_kernel(%arg0: i32, %arg1: memref<8x256xf32, #tpu.memory_space<vmem>>, %arg2: memref<3x3x8x8xf32, #tpu.memory_space<vmem>>, %arg3: memref<8x1xf32, #tpu.memory_space<vmem>>, %arg4: memref<8x1xf32, #tpu.memory_space<vmem>>, %arg5: memref<3x3x8x8xf32, #tpu.memory_space<vmem>>, %arg6: memref<8x1xf32, #tpu.memory_space<vmem>>, %arg7: memref<8x1xf32, #tpu.memory_space<vmem>>, %arg8: memref<8x256xf32, #tpu.memory_space<vmem>>, %arg9: memref<8x512xf32, #tpu.memory_space<vmem>>) attributes {dimension_semantics = [#tpu.dimension_semantics<arbitrary>], iteration_bounds = array<i64: 1>, scalar_prefetch = 0 : i64, scratch_operands = 1 : i64, tpu.core_type = #tpu.core_type<tc>, window_params = [{pipeline_mode = #tpu.pipeline_mode<synchronous>, transform_indices = @transform_0, window_bounds = array<i64: 8, 256>}, {pipeline_mode = #tpu.pipeline_mode<synchronous>, transform_indices = @transform_1, window_bounds = array<i64: 3, 3, 8, 8>}, {pipeline_mode = #tpu.pipeline_mode<synchronous>, transform_indices = @transform_2, window_bounds = array<i64: 8, 1>}, {pipeline_mode = #tpu.pipeline_mode<synchronous>, transform_indices = @transform_3, window_bounds = array<i64: 8, 1>}, {pipeline_mode = #tpu.pipeline_mode<synchronous>, transform_indices = @transform_4, window_bounds = array<i64: 3, 3, 8, 8>}, {pipeline_mode = #tpu.pipeline_mode<synchronous>, transform_indices = @transform_5, window_bounds = array<i64: 8, 1>}, {pipeline_mode = #tpu.pipeline_mode<synchronous>, transform_indices = @transform_6, window_bounds = array<i64: 8, 1>}, {pipeline_mode = #tpu.pipeline_mode<synchronous>, transform_indices = @transform_7, window_bounds = array<i64: 8, 256>}]} {
    %cst = arith.constant 0.000000e+00 : f32
    %0 = vector.broadcast %cst : f32 to vector<8x128xf32>
    %c0 = arith.constant 0 : index
    %c0_0 = arith.constant 0 : index
    %1 = vector.load %arg9[%c0, %c0_0] : memref<8x512xf32, #tpu.memory_space<vmem>>, vector<8x128xf32>
    tpu.vector_store %arg9[%c0, %c0_0], %0 {strides = array<i32>} : memref<8x512xf32, #tpu.memory_space<vmem>>, vector<8x128xf32>,
    %cst_1 = arith.constant 0.000000e+00 : f32
    %2 = vector.broadcast %cst_1 : f32 to vector<8x128xf32>
    %c0_2 = arith.constant 0 : index
    %c384 = arith.constant 384 : index
    %3 = vector.load %arg9[%c0_2, %c384] : memref<8x512xf32, #tpu.memory_space<vmem>>, vector<8x128xf32>
    tpu.vector_store %arg9[%c0_2, %c384], %2 {strides = array<i32>} : memref<8x512xf32, #tpu.memory_space<vmem>>, vector<8x128xf32>,
    %4 = tpu.iota {dimensions = array<i32: 1>} : vector<8x256xi32>
    %c16_i32 = arith.constant 16 : i32
    %c0_i32 = arith.constant 0 : i32
    %5 = arith.cmpi eq, %c16_i32, %c0_i32 : i32
    %c1_i32 = arith.constant 1 : i32
    %6 = arith.select %5, %c1_i32, %c16_i32 : i32
    %7 = vector.broadcast %6 : i32 to vector<8x256xi32>
    %8 = arith.remsi %4, %7 : vector<8x256xi32>
    %c0_i32_3 = arith.constant 0 : i32
    %9 = vector.broadcast %c0_i32_3 : i32 to vector<8x256xi32>
    %10 = arith.cmpi ne, %8, %9 : vector<8x256xi32>
    %c0_i32_4 = arith.constant 0 : i32
    %11 = vector.broadcast %c0_i32_4 : i32 to vector<8x256xi32>
    %12 = arith.cmpi slt, %8, %11 : vector<8x256xi32>
    %c0_i32_5 = arith.constant 0 : i32
    %13 = arith.cmpi slt, %6, %c0_i32_5 : i32
    %14 = vector.broadcast %13 : i1 to vector<8x256xi1>
    %15 = vector.broadcast %14 : vector<8x256xi1> to vector<8x256xi1>
    %16 = arith.xori %12, %15 : vector<8x256xi1>
    %17 = arith.andi %16, %10 : vector<8x256xi1>
    %18 = vector.broadcast %6 : i32 to vector<8x256xi32>
    %19 = arith.addi %8, %18 : vector<8x256xi32>
    %20 = arith.select %17, %19, %8 : vector<8x256xi1>, vector<8x256xi32>
    %c1_i32_6 = arith.constant 1 : i32
    %21 = vector.broadcast %c1_i32_6 : i32 to vector<8x256xi32>
    %22 = arith.cmpi sge, %20, %21 : vector<8x256xi32>
    %c14_i32 = arith.constant 14 : i32
    %23 = vector.broadcast %c14_i32 : i32 to vector<8x256xi32>
    %24 = arith.cmpi sle, %20, %23 : vector<8x256xi32>
    %c0_7 = arith.constant 0 : index
    %c0_8 = arith.constant 0 : index
    %25 = vector.load %arg1[%c0_7, %c0_8] : memref<8x256xf32, #tpu.memory_space<vmem>>, vector<8x256xf32>
    %cst_9 = arith.constant 0.000000e+00 : f32
    %26 = vector.broadcast %cst_9 : f32 to vector<8x256xf32>
    %27 = arith.maximumf %25, %26 : vector<8x256xf32>
    %c0_10 = arith.constant 0 : index
    %c128 = arith.constant 128 : index
    %28 = vector.load %arg9[%c0_10, %c128] : memref<8x512xf32, #tpu.memory_space<vmem>>, vector<8x256xf32>
    tpu.vector_store %arg9[%c0_10, %c128], %27 {strides = array<i32>} : memref<8x512xf32, #tpu.memory_space<vmem>>, vector<8x256xf32>,
    %c0_11 = arith.constant 0 : index
    %c111 = arith.constant 111 : index
    %29 = vector.load %arg9[%c0_11, %c111] : memref<8x512xf32, #tpu.memory_space<vmem>>, vector<8x256xf32>
    %cst_12 = arith.constant 0.000000e+00 : f32
    %30 = vector.broadcast %cst_12 : f32 to vector<8x256xf32>
    %31 = arith.select %22, %29, %30 : vector<8x256xi1>, vector<8x256xf32>
    %c0_13 = arith.constant 0 : index
    %c0_14 = arith.constant 0 : index
    %c0_15 = arith.constant 0 : index
    %c0_16 = arith.constant 0 : index
    %32 = vector.load %arg2[%c0_13, %c0_14, %c0_15, %c0_16] : memref<3x3x8x8xf32, #tpu.memory_space<vmem>>, vector<1x1x8x8xf32>
    %33 = vector.shape_cast %32 : vector<1x1x8x8xf32> to vector<8x8xf32>
    %cst_17 = arith.constant dense<0.000000e+00> : vector<8x256xf32>
    %34 = tpu.matmul %33, %31, %cst_17 {dimension_numbers = #tpu.dot_dimension_numbers<[1], [0], [0], [1], [0, 0, 1, 1], [], []>} : vector<8x8xf32>, vector<8x256xf32>, vector<8x256xf32> -> vector<8x256xf32>
    %c0_18 = arith.constant 0 : index
    %c112 = arith.constant 112 : index
    %35 = vector.load %arg9[%c0_18, %c112] : memref<8x512xf32, #tpu.memory_space<vmem>>, vector<8x256xf32>
    %c0_19 = arith.constant 0 : index
    %c1 = arith.constant 1 : index
    %c0_20 = arith.constant 0 : index
    %c0_21 = arith.constant 0 : index
    %36 = vector.load %arg2[%c0_19, %c1, %c0_20, %c0_21] : memref<3x3x8x8xf32, #tpu.memory_space<vmem>>, vector<1x1x8x8xf32>
    %37 = vector.shape_cast %36 : vector<1x1x8x8xf32> to vector<8x8xf32>
    %cst_22 = arith.constant dense<0.000000e+00> : vector<8x256xf32>
    %38 = tpu.matmul %37, %35, %cst_22 {dimension_numbers = #tpu.dot_dimension_numbers<[1], [0], [0], [1], [0, 0, 1, 1], [], []>} : vector<8x8xf32>, vector<8x256xf32>, vector<8x256xf32> -> vector<8x256xf32>
    %39 = arith.addf %34, %38 : vector<8x256xf32>
    %c0_23 = arith.constant 0 : index
    %c113 = arith.constant 113 : index
    %40 = vector.load %arg9[%c0_23, %c113] : memref<8x512xf32, #tpu.memory_space<vmem>>, vector<8x256xf32>
    %cst_24 = arith.constant 0.000000e+00 : f32
    %41 = vector.broadcast %cst_24 : f32 to vector<8x256xf32>
    %42 = arith.select %24, %40, %41 : vector<8x256xi1>, vector<8x256xf32>
    %c0_25 = arith.constant 0 : index
    %c2 = arith.constant 2 : index
    %c0_26 = arith.constant 0 : index
    %c0_27 = arith.constant 0 : index
    %43 = vector.load %arg2[%c0_25, %c2, %c0_26, %c0_27] : memref<3x3x8x8xf32, #tpu.memory_space<vmem>>, vector<1x1x8x8xf32>
    %44 = vector.shape_cast %43 : vector<1x1x8x8xf32> to vector<8x8xf32>
    %cst_28 = arith.constant dense<0.000000e+00> : vector<8x256xf32>
    %45 = tpu.matmul %44, %42, %cst_28 {dimension_numbers = #tpu.dot_dimension_numbers<[1], [0], [0], [1], [0, 0, 1, 1], [], []>} : vector<8x8xf32>, vector<8x256xf32>, vector<8x256xf32> -> vector<8x256xf32>
    %46 = arith.addf %39, %45 : vector<8x256xf32>
    %c0_29 = arith.constant 0 : index
    %c127 = arith.constant 127 : index
    %47 = vector.load %arg9[%c0_29, %c127] : memref<8x512xf32, #tpu.memory_space<vmem>>, vector<8x256xf32>
    %cst_30 = arith.constant 0.000000e+00 : f32
    %48 = vector.broadcast %cst_30 : f32 to vector<8x256xf32>
    %49 = arith.select %22, %47, %48 : vector<8x256xi1>, vector<8x256xf32>
    %c1_31 = arith.constant 1 : index
    %c0_32 = arith.constant 0 : index
    %c0_33 = arith.constant 0 : index
    %c0_34 = arith.constant 0 : index
    %50 = vector.load %arg2[%c1_31, %c0_32, %c0_33, %c0_34] : memref<3x3x8x8xf32, #tpu.memory_space<vmem>>, vector<1x1x8x8xf32>
    %51 = vector.shape_cast %50 : vector<1x1x8x8xf32> to vector<8x8xf32>
    %cst_35 = arith.constant dense<0.000000e+00> : vector<8x256xf32>
    %52 = tpu.matmul %51, %49, %cst_35 {dimension_numbers = #tpu.dot_dimension_numbers<[1], [0], [0], [1], [0, 0, 1, 1], [], []>} : vector<8x8xf32>, vector<8x256xf32>, vector<8x256xf32> -> vector<8x256xf32>
    %53 = arith.addf %46, %52 : vector<8x256xf32>
    %c0_36 = arith.constant 0 : index
    %c128_37 = arith.constant 128 : index
    %54 = vector.load %arg9[%c0_36, %c128_37] : memref<8x512xf32, #tpu.memory_space<vmem>>, vector<8x256xf32>
    %c1_38 = arith.constant 1 : index
    %c1_39 = arith.constant 1 : index
    %c0_40 = arith.constant 0 : index
    %c0_41 = arith.constant 0 : index
    %55 = vector.load %arg2[%c1_38, %c1_39, %c0_40, %c0_41] : memref<3x3x8x8xf32, #tpu.memory_space<vmem>>, vector<1x1x8x8xf32>
    %56 = vector.shape_cast %55 : vector<1x1x8x8xf32> to vector<8x8xf32>
    %cst_42 = arith.constant dense<0.000000e+00> : vector<8x256xf32>
    %57 = tpu.matmul %56, %54, %cst_42 {dimension_numbers = #tpu.dot_dimension_numbers<[1], [0], [0], [1], [0, 0, 1, 1], [], []>} : vector<8x8xf32>, vector<8x256xf32>, vector<8x256xf32> -> vector<8x256xf32>
    %58 = arith.addf %53, %57 : vector<8x256xf32>
    %c0_43 = arith.constant 0 : index
    %c129 = arith.constant 129 : index
    %59 = vector.load %arg9[%c0_43, %c129] : memref<8x512xf32, #tpu.memory_space<vmem>>, vector<8x256xf32>
    %cst_44 = arith.constant 0.000000e+00 : f32
    %60 = vector.broadcast %cst_44 : f32 to vector<8x256xf32>
    %61 = arith.select %24, %59, %60 : vector<8x256xi1>, vector<8x256xf32>
    %c1_45 = arith.constant 1 : index
    %c2_46 = arith.constant 2 : index
    %c0_47 = arith.constant 0 : index
    %c0_48 = arith.constant 0 : index
    %62 = vector.load %arg2[%c1_45, %c2_46, %c0_47, %c0_48] : memref<3x3x8x8xf32, #tpu.memory_space<vmem>>, vector<1x1x8x8xf32>
    %63 = vector.shape_cast %62 : vector<1x1x8x8xf32> to vector<8x8xf32>
    %cst_49 = arith.constant dense<0.000000e+00> : vector<8x256xf32>
    %64 = tpu.matmul %63, %61, %cst_49 {dimension_numbers = #tpu.dot_dimension_numbers<[1], [0], [0], [1], [0, 0, 1, 1], [], []>} : vector<8x8xf32>, vector<8x256xf32>, vector<8x256xf32> -> vector<8x256xf32>
    %65 = arith.addf %58, %64 : vector<8x256xf32>
    %c0_50 = arith.constant 0 : index
    %c143 = arith.constant 143 : index
    %66 = vector.load %arg9[%c0_50, %c143] : memref<8x512xf32, #tpu.memory_space<vmem>>, vector<8x256xf32>
    %cst_51 = arith.constant 0.000000e+00 : f32
    %67 = vector.broadcast %cst_51 : f32 to vector<8x256xf32>
    %68 = arith.select %22, %66, %67 : vector<8x256xi1>, vector<8x256xf32>
    %c2_52 = arith.constant 2 : index
    %c0_53 = arith.constant 0 : index
    %c0_54 = arith.constant 0 : index
    %c0_55 = arith.constant 0 : index
    %69 = vector.load %arg2[%c2_52, %c0_53, %c0_54, %c0_55] : memref<3x3x8x8xf32, #tpu.memory_space<vmem>>, vector<1x1x8x8xf32>
    %70 = vector.shape_cast %69 : vector<1x1x8x8xf32> to vector<8x8xf32>
    %cst_56 = arith.constant dense<0.000000e+00> : vector<8x256xf32>
    %71 = tpu.matmul %70, %68, %cst_56 {dimension_numbers = #tpu.dot_dimension_numbers<[1], [0], [0], [1], [0, 0, 1, 1], [], []>} : vector<8x8xf32>, vector<8x256xf32>, vector<8x256xf32> -> vector<8x256xf32>
    %72 = arith.addf %65, %71 : vector<8x256xf32>
    %c0_57 = arith.constant 0 : index
    %c144 = arith.constant 144 : index
    %73 = vector.load %arg9[%c0_57, %c144] : memref<8x512xf32, #tpu.memory_space<vmem>>, vector<8x256xf32>
    %c2_58 = arith.constant 2 : index
    %c1_59 = arith.constant 1 : index
    %c0_60 = arith.constant 0 : index
    %c0_61 = arith.constant 0 : index
    %74 = vector.load %arg2[%c2_58, %c1_59, %c0_60, %c0_61] : memref<3x3x8x8xf32, #tpu.memory_space<vmem>>, vector<1x1x8x8xf32>
    %75 = vector.shape_cast %74 : vector<1x1x8x8xf32> to vector<8x8xf32>
    %cst_62 = arith.constant dense<0.000000e+00> : vector<8x256xf32>
    %76 = tpu.matmul %75, %73, %cst_62 {dimension_numbers = #tpu.dot_dimension_numbers<[1], [0], [0], [1], [0, 0, 1, 1], [], []>} : vector<8x8xf32>, vector<8x256xf32>, vector<8x256xf32> -> vector<8x256xf32>
    %77 = arith.addf %72, %76 : vector<8x256xf32>
    %c0_63 = arith.constant 0 : index
    %c145 = arith.constant 145 : index
    %78 = vector.load %arg9[%c0_63, %c145] : memref<8x512xf32, #tpu.memory_space<vmem>>, vector<8x256xf32>
    %cst_64 = arith.constant 0.000000e+00 : f32
    %79 = vector.broadcast %cst_64 : f32 to vector<8x256xf32>
    %80 = arith.select %24, %78, %79 : vector<8x256xi1>, vector<8x256xf32>
    %c2_65 = arith.constant 2 : index
    %c2_66 = arith.constant 2 : index
    %c0_67 = arith.constant 0 : index
    %c0_68 = arith.constant 0 : index
    %81 = vector.load %arg2[%c2_65, %c2_66, %c0_67, %c0_68] : memref<3x3x8x8xf32, #tpu.memory_space<vmem>>, vector<1x1x8x8xf32>
    %82 = vector.shape_cast %81 : vector<1x1x8x8xf32> to vector<8x8xf32>
    %cst_69 = arith.constant dense<0.000000e+00> : vector<8x256xf32>
    %83 = tpu.matmul %82, %80, %cst_69 {dimension_numbers = #tpu.dot_dimension_numbers<[1], [0], [0], [1], [0, 0, 1, 1], [], []>} : vector<8x8xf32>, vector<8x256xf32>, vector<8x256xf32> -> vector<8x256xf32>
    %84 = arith.addf %77, %83 : vector<8x256xf32>
    %c0_70 = arith.constant 0 : index
    %c0_71 = arith.constant 0 : index
    %85 = vector.load %arg3[%c0_70, %c0_71] : memref<8x1xf32, #tpu.memory_space<vmem>>, vector<8x1xf32>
    %86 = vector.broadcast %85 : vector<8x1xf32> to vector<8x256xf32>
    %87 = arith.mulf %84, %86 : vector<8x256xf32>
    %c0_72 = arith.constant 0 : index
    %c0_73 = arith.constant 0 : index
    %88 = vector.load %arg4[%c0_72, %c0_73] : memref<8x1xf32, #tpu.memory_space<vmem>>, vector<8x1xf32>
    %89 = vector.broadcast %88 : vector<8x1xf32> to vector<8x256xf32>
    %90 = arith.addf %87, %89 : vector<8x256xf32>
    %cst_74 = arith.constant 0.000000e+00 : f32
    %91 = vector.broadcast %cst_74 : f32 to vector<8x256xf32>
    %92 = arith.maximumf %90, %91 : vector<8x256xf32>
    %c0_75 = arith.constant 0 : index
    %c128_76 = arith.constant 128 : index
    %93 = vector.load %arg9[%c0_75, %c128_76] : memref<8x512xf32, #tpu.memory_space<vmem>>, vector<8x256xf32>
    tpu.vector_store %arg9[%c0_75, %c128_76], %92 {strides = array<i32>} : memref<8x512xf32, #tpu.memory_space<vmem>>, vector<8x256xf32>,
    %c0_77 = arith.constant 0 : index
    %c111_78 = arith.constant 111 : index
    %94 = vector.load %arg9[%c0_77, %c111_78] : memref<8x512xf32, #tpu.memory_space<vmem>>, vector<8x256xf32>
    %cst_79 = arith.constant 0.000000e+00 : f32
    %95 = vector.broadcast %cst_79 : f32 to vector<8x256xf32>
    %96 = arith.select %22, %94, %95 : vector<8x256xi1>, vector<8x256xf32>
    %c0_80 = arith.constant 0 : index
    %c0_81 = arith.constant 0 : index
    %c0_82 = arith.constant 0 : index
    %c0_83 = arith.constant 0 : index
    %97 = vector.load %arg5[%c0_80, %c0_81, %c0_82, %c0_83] : memref<3x3x8x8xf32, #tpu.memory_space<vmem>>, vector<1x1x8x8xf32>
    %98 = vector.shape_cast %97 : vector<1x1x8x8xf32> to vector<8x8xf32>
    %cst_84 = arith.constant dense<0.000000e+00> : vector<8x256xf32>
    %99 = tpu.matmul %98, %96, %cst_84 {dimension_numbers = #tpu.dot_dimension_numbers<[1], [0], [0], [1], [0, 0, 1, 1], [], []>} : vector<8x8xf32>, vector<8x256xf32>, vector<8x256xf32> -> vector<8x256xf32>
    %c0_85 = arith.constant 0 : index
    %c112_86 = arith.constant 112 : index
    %100 = vector.load %arg9[%c0_85, %c112_86] : memref<8x512xf32, #tpu.memory_space<vmem>>, vector<8x256xf32>
    %c0_87 = arith.constant 0 : index
    %c1_88 = arith.constant 1 : index
    %c0_89 = arith.constant 0 : index
    %c0_90 = arith.constant 0 : index
    %101 = vector.load %arg5[%c0_87, %c1_88, %c0_89, %c0_90] : memref<3x3x8x8xf32, #tpu.memory_space<vmem>>, vector<1x1x8x8xf32>
    %102 = vector.shape_cast %101 : vector<1x1x8x8xf32> to vector<8x8xf32>
    %cst_91 = arith.constant dense<0.000000e+00> : vector<8x256xf32>
    %103 = tpu.matmul %102, %100, %cst_91 {dimension_numbers = #tpu.dot_dimension_numbers<[1], [0], [0], [1], [0, 0, 1, 1], [], []>} : vector<8x8xf32>, vector<8x256xf32>, vector<8x256xf32> -> vector<8x256xf32>
    %104 = arith.addf %99, %103 : vector<8x256xf32>
    %c0_92 = arith.constant 0 : index
    %c113_93 = arith.constant 113 : index
    %105 = vector.load %arg9[%c0_92, %c113_93] : memref<8x512xf32, #tpu.memory_space<vmem>>, vector<8x256xf32>
    %cst_94 = arith.constant 0.000000e+00 : f32
    %106 = vector.broadcast %cst_94 : f32 to vector<8x256xf32>
    %107 = arith.select %24, %105, %106 : vector<8x256xi1>, vector<8x256xf32>
    %c0_95 = arith.constant 0 : index
    %c2_96 = arith.constant 2 : index
    %c0_97 = arith.constant 0 : index
    %c0_98 = arith.constant 0 : index
    %108 = vector.load %arg5[%c0_95, %c2_96, %c0_97, %c0_98] : memref<3x3x8x8xf32, #tpu.memory_space<vmem>>, vector<1x1x8x8xf32>
    %109 = vector.shape_cast %108 : vector<1x1x8x8xf32> to vector<8x8xf32>
    %cst_99 = arith.constant dense<0.000000e+00> : vector<8x256xf32>
    %110 = tpu.matmul %109, %107, %cst_99 {dimension_numbers = #tpu.dot_dimension_numbers<[1], [0], [0], [1], [0, 0, 1, 1], [], []>} : vector<8x8xf32>, vector<8x256xf32>, vector<8x256xf32> -> vector<8x256xf32>
    %111 = arith.addf %104, %110 : vector<8x256xf32>
    %c0_100 = arith.constant 0 : index
    %c127_101 = arith.constant 127 : index
    %112 = vector.load %arg9[%c0_100, %c127_101] : memref<8x512xf32, #tpu.memory_space<vmem>>, vector<8x256xf32>
    %cst_102 = arith.constant 0.000000e+00 : f32
    %113 = vector.broadcast %cst_102 : f32 to vector<8x256xf32>
    %114 = arith.select %22, %112, %113 : vector<8x256xi1>, vector<8x256xf32>
    %c1_103 = arith.constant 1 : index
    %c0_104 = arith.constant 0 : index
    %c0_105 = arith.constant 0 : index
    %c0_106 = arith.constant 0 : index
    %115 = vector.load %arg5[%c1_103, %c0_104, %c0_105, %c0_106] : memref<3x3x8x8xf32, #tpu.memory_space<vmem>>, vector<1x1x8x8xf32>
    %116 = vector.shape_cast %115 : vector<1x1x8x8xf32> to vector<8x8xf32>
    %cst_107 = arith.constant dense<0.000000e+00> : vector<8x256xf32>
    %117 = tpu.matmul %116, %114, %cst_107 {dimension_numbers = #tpu.dot_dimension_numbers<[1], [0], [0], [1], [0, 0, 1, 1], [], []>} : vector<8x8xf32>, vector<8x256xf32>, vector<8x256xf32> -> vector<8x256xf32>
    %118 = arith.addf %111, %117 : vector<8x256xf32>
    %c0_108 = arith.constant 0 : index
    %c128_109 = arith.constant 128 : index
    %119 = vector.load %arg9[%c0_108, %c128_109] : memref<8x512xf32, #tpu.memory_space<vmem>>, vector<8x256xf32>
    %c1_110 = arith.constant 1 : index
    %c1_111 = arith.constant 1 : index
    %c0_112 = arith.constant 0 : index
    %c0_113 = arith.constant 0 : index
    %120 = vector.load %arg5[%c1_110, %c1_111, %c0_112, %c0_113] : memref<3x3x8x8xf32, #tpu.memory_space<vmem>>, vector<1x1x8x8xf32>
    %121 = vector.shape_cast %120 : vector<1x1x8x8xf32> to vector<8x8xf32>
    %cst_114 = arith.constant dense<0.000000e+00> : vector<8x256xf32>
    %122 = tpu.matmul %121, %119, %cst_114 {dimension_numbers = #tpu.dot_dimension_numbers<[1], [0], [0], [1], [0, 0, 1, 1], [], []>} : vector<8x8xf32>, vector<8x256xf32>, vector<8x256xf32> -> vector<8x256xf32>
    %123 = arith.addf %118, %122 : vector<8x256xf32>
    %c0_115 = arith.constant 0 : index
    %c129_116 = arith.constant 129 : index
    %124 = vector.load %arg9[%c0_115, %c129_116] : memref<8x512xf32, #tpu.memory_space<vmem>>, vector<8x256xf32>
    %cst_117 = arith.constant 0.000000e+00 : f32
    %125 = vector.broadcast %cst_117 : f32 to vector<8x256xf32>
    %126 = arith.select %24, %124, %125 : vector<8x256xi1>, vector<8x256xf32>
    %c1_118 = arith.constant 1 : index
    %c2_119 = arith.constant 2 : index
    %c0_120 = arith.constant 0 : index
    %c0_121 = arith.constant 0 : index
    %127 = vector.load %arg5[%c1_118, %c2_119, %c0_120, %c0_121] : memref<3x3x8x8xf32, #tpu.memory_space<vmem>>, vector<1x1x8x8xf32>
    %128 = vector.shape_cast %127 : vector<1x1x8x8xf32> to vector<8x8xf32>
    %cst_122 = arith.constant dense<0.000000e+00> : vector<8x256xf32>
    %129 = tpu.matmul %128, %126, %cst_122 {dimension_numbers = #tpu.dot_dimension_numbers<[1], [0], [0], [1], [0, 0, 1, 1], [], []>} : vector<8x8xf32>, vector<8x256xf32>, vector<8x256xf32> -> vector<8x256xf32>
    %130 = arith.addf %123, %129 : vector<8x256xf32>
    %c0_123 = arith.constant 0 : index
    %c143_124 = arith.constant 143 : index
    %131 = vector.load %arg9[%c0_123, %c143_124] : memref<8x512xf32, #tpu.memory_space<vmem>>, vector<8x256xf32>
    %cst_125 = arith.constant 0.000000e+00 : f32
    %132 = vector.broadcast %cst_125 : f32 to vector<8x256xf32>
    %133 = arith.select %22, %131, %132 : vector<8x256xi1>, vector<8x256xf32>
    %c2_126 = arith.constant 2 : index
    %c0_127 = arith.constant 0 : index
    %c0_128 = arith.constant 0 : index
    %c0_129 = arith.constant 0 : index
    %134 = vector.load %arg5[%c2_126, %c0_127, %c0_128, %c0_129] : memref<3x3x8x8xf32, #tpu.memory_space<vmem>>, vector<1x1x8x8xf32>
    %135 = vector.shape_cast %134 : vector<1x1x8x8xf32> to vector<8x8xf32>
    %cst_130 = arith.constant dense<0.000000e+00> : vector<8x256xf32>
    %136 = tpu.matmul %135, %133, %cst_130 {dimension_numbers = #tpu.dot_dimension_numbers<[1], [0], [0], [1], [0, 0, 1, 1], [], []>} : vector<8x8xf32>, vector<8x256xf32>, vector<8x256xf32> -> vector<8x256xf32>
    %137 = arith.addf %130, %136 : vector<8x256xf32>
    %c0_131 = arith.constant 0 : index
    %c144_132 = arith.constant 144 : index
    %138 = vector.load %arg9[%c0_131, %c144_132] : memref<8x512xf32, #tpu.memory_space<vmem>>, vector<8x256xf32>
    %c2_133 = arith.constant 2 : index
    %c1_134 = arith.constant 1 : index
    %c0_135 = arith.constant 0 : index
    %c0_136 = arith.constant 0 : index
    %139 = vector.load %arg5[%c2_133, %c1_134, %c0_135, %c0_136] : memref<3x3x8x8xf32, #tpu.memory_space<vmem>>, vector<1x1x8x8xf32>
    %140 = vector.shape_cast %139 : vector<1x1x8x8xf32> to vector<8x8xf32>
    %cst_137 = arith.constant dense<0.000000e+00> : vector<8x256xf32>
    %141 = tpu.matmul %140, %138, %cst_137 {dimension_numbers = #tpu.dot_dimension_numbers<[1], [0], [0], [1], [0, 0, 1, 1], [], []>} : vector<8x8xf32>, vector<8x256xf32>, vector<8x256xf32> -> vector<8x256xf32>
    %142 = arith.addf %137, %141 : vector<8x256xf32>
    %c0_138 = arith.constant 0 : index
    %c145_139 = arith.constant 145 : index
    %143 = vector.load %arg9[%c0_138, %c145_139] : memref<8x512xf32, #tpu.memory_space<vmem>>, vector<8x256xf32>
    %cst_140 = arith.constant 0.000000e+00 : f32
    %144 = vector.broadcast %cst_140 : f32 to vector<8x256xf32>
    %145 = arith.select %24, %143, %144 : vector<8x256xi1>, vector<8x256xf32>
    %c2_141 = arith.constant 2 : index
    %c2_142 = arith.constant 2 : index
    %c0_143 = arith.constant 0 : index
    %c0_144 = arith.constant 0 : index
    %146 = vector.load %arg5[%c2_141, %c2_142, %c0_143, %c0_144] : memref<3x3x8x8xf32, #tpu.memory_space<vmem>>, vector<1x1x8x8xf32>
    %147 = vector.shape_cast %146 : vector<1x1x8x8xf32> to vector<8x8xf32>
    %cst_145 = arith.constant dense<0.000000e+00> : vector<8x256xf32>
    %148 = tpu.matmul %147, %145, %cst_145 {dimension_numbers = #tpu.dot_dimension_numbers<[1], [0], [0], [1], [0, 0, 1, 1], [], []>} : vector<8x8xf32>, vector<8x256xf32>, vector<8x256xf32> -> vector<8x256xf32>
    %149 = arith.addf %142, %148 : vector<8x256xf32>
    %c0_146 = arith.constant 0 : index
    %c0_147 = arith.constant 0 : index
    %150 = vector.load %arg6[%c0_146, %c0_147] : memref<8x1xf32, #tpu.memory_space<vmem>>, vector<8x1xf32>
    %151 = vector.broadcast %150 : vector<8x1xf32> to vector<8x256xf32>
    %152 = arith.mulf %149, %151 : vector<8x256xf32>
    %c0_148 = arith.constant 0 : index
    %c0_149 = arith.constant 0 : index
    %153 = vector.load %arg7[%c0_148, %c0_149] : memref<8x1xf32, #tpu.memory_space<vmem>>, vector<8x1xf32>
    %154 = vector.broadcast %153 : vector<8x1xf32> to vector<8x256xf32>
    %155 = arith.addf %152, %154 : vector<8x256xf32>
    %156 = arith.addf %155, %25 : vector<8x256xf32>
    %c0_150 = arith.constant 0 : index
    %c0_151 = arith.constant 0 : index
    %157 = vector.load %arg8[%c0_150, %c0_151] : memref<8x256xf32, #tpu.memory_space<vmem>>, vector<8x256xf32>
    tpu.vector_store %arg8[%c0_150, %c0_151], %156 {strides = array<i32>} : memref<8x256xf32, #tpu.memory_space<vmem>>, vector<8x256xf32>,
    return
  }
  func.func @transform_0(%arg0: i32) -> (i32, i32) {
    %c0_i32 = arith.constant 0 : i32
    %c0_i32_0 = arith.constant 0 : i32
    %c0_i32_1 = arith.constant 0 : i32
    return %c0_i32, %c0_i32_0 : i32, i32
  }
  func.func @transform_1(%arg0: i32) -> (i32, i32, i32, i32) {
    %c0_i32 = arith.constant 0 : i32
    %c0_i32_0 = arith.constant 0 : i32
    %c0_i32_1 = arith.constant 0 : i32
    %c0_i32_2 = arith.constant 0 : i32
    %c0_i32_3 = arith.constant 0 : i32
    return %c0_i32, %c0_i32_0, %c0_i32_1, %c0_i32_2 : i32, i32, i32, i32
  }
  func.func @transform_2(%arg0: i32) -> (i32, i32) {
    %c0_i32 = arith.constant 0 : i32
    %c0_i32_0 = arith.constant 0 : i32
    %c0_i32_1 = arith.constant 0 : i32
    return %c0_i32, %c0_i32_0 : i32, i32
  }
  func.func @transform_3(%arg0: i32) -> (i32, i32) {
    %c0_i32 = arith.constant 0 : i32
    %c0_i32_0 = arith.constant 0 : i32
    %c0_i32_1 = arith.constant 0 : i32
    return %c0_i32, %c0_i32_0 : i32, i32
  }
  func.func @transform_4(%arg0: i32) -> (i32, i32, i32, i32) {
    %c0_i32 = arith.constant 0 : i32
    %c0_i32_0 = arith.constant 0 : i32
    %c0_i32_1 = arith.constant 0 : i32
    %c0_i32_2 = arith.constant 0 : i32
    %c0_i32_3 = arith.constant 0 : i32
    return %c0_i32, %c0_i32_0, %c0_i32_1, %c0_i32_2 : i32, i32, i32, i32
  }
  func.func @transform_5(%arg0: i32) -> (i32, i32) {
    %c0_i32 = arith.constant 0 : i32
    %c0_i32_0 = arith.constant 0 : i32
    %c0_i32_1 = arith.constant 0 : i32
    return %c0_i32, %c0_i32_0 : i32, i32
  }
  func.func @transform_6(%arg0: i32) -> (i32, i32) {
    %c0_i32 = arith.constant 0 : i32
    %c0_i32_0 = arith.constant 0 : i32
    %c0_i32_1 = arith.constant 0 : i32
    return %c0_i32, %c0_i32_0 : i32, i32
  }
  func.func @transform_7(%arg0: i32) -> (i32, i32) {
    %c0_i32 = arith.constant 0 : i32
    %c0_i32_0 = arith.constant 0 : i32
    %c0_i32_1 = arith.constant 0 : i32
    return %c0_i32, %c0_i32_0 : i32, i32
  }
}

</mosaic_0001>

<bundles_post_ra>
// kernel: tpu_custom_call.1
= control target key start
LH: loop header
LB: loop body
LE: loop exit
PB: predicated region body
PF: predicated region fallthrough
CT: control target
= control target key end

     0   :  { %12 = vsyncpa [#allocation4], 0  ;;  %s2281_s0 = inlined_call_operand.vmem [shape: f32[8,256], index: 0, kind: input, shape index: {}]   ;;  %s2282_s1 = inlined_call_operand.hbm [shape: f32[3,3,8,8], index: 1, kind: input, shape index: {}]   ;;  %s2283_s2 = inlined_call_operand.vmem [shape: f32[8,1], index: 2, kind: input, shape index: {}]   ;;  %s2284_s3 = inlined_call_operand.vmem [shape: f32[8,1], index: 3, kind: input, shape index: {}]   ;;  %s2285_s4 = inlined_call_operand.hbm [shape: f32[3,3,8,8], index: 4, kind: input, shape index: {}]   ;;  %s2286_s5 = inlined_call_operand.vmem [shape: f32[8,1], index: 5, kind: input, shape index: {}]   ;;  %s2287_s6 = inlined_call_operand.vmem [shape: f32[8,1], index: 6, kind: input, shape index: {}]   ;;  %s2288_s7 = inlined_call_operand.hbm [shape: f32[8,256], index: 7, kind: output, shape index: {}]  }
   0x1   :  { %13 = vsyncpa [#allocation7], 0 }
   0x2   :  { %14 = vsyncpa [#allocation5], 0  ;;  %s1924_s24 = smov [#allocation3]   ;;  %s1852_s28 = scalar_lea.hbm %s2282_s1, 1152 }
   0x3   :  { %s22_s25 = sshll.u32 %s1924_s24, 4  ;;  %p1853_p0 = scmp.ne.s32.totalorder %s2282_s1, %s1852_s28  ;;  %s23_s25 = int_to_ptr.vmem [resolvable:$true] %s22_s25 }
   0x4   :  { %p1856_p1 = scmp.lt.u32.totalorder %s1852_s28, %s2282_s1 }
   0x6   :  { %p1858_p2 = pnand %p1856_p1, %p1853_p0 }
   0x8   :  { %1861 = shalt.err (!%p1858_p2)
}
   0x9   :  { %s1862_s10 = scalar_lea.vmem %s23_s25, 1152  ;;  %p1867_p4 = scmp.lt.s32.totalorder %s23_s25, %s23_s25 }
   0xa   :  { %p1863_p3 = scmp.ne.s32.totalorder %s23_s25, %s1862_s10  ;;  %p1868_p5 = scmp.lt.s32.totalorder %s1862_s10, %s1862_s10 }
   0xc   :  { %p1869_p6 = por %p1868_p5, %p1867_p4 }
   0xe   :  { %p1870_p7 = pnand %p1869_p6, %p1863_p3 }
  0x10   :  { %1873 = shalt.err (!%p1870_p7)
}
  0x11   :  { %s1925_s11 = smov 128   ;;  %s1926_s12 = smov 8  }
  0x12   :  { %28 = dma.hbm_to_vmem [thread:$0]  %s2282_s1, 1152, %s23_s25, [#allocation4], %s1925_s11, %s1925_s11, %s1926_s12  }
  0x13   :  { %s1927_s15 = smov [#allocation6]   ;;  %s1874_s19 = scalar_lea.hbm %s2285_s4, 1152 }
  0x14   :  { %s38_s16 = sshll.u32 %s1927_s15, 4  ;;  %p1875_p8 = scmp.ne.s32.totalorder %s2285_s4, %s1874_s19  ;;  %s39_s16 = int_to_ptr.vmem [resolvable:$true] %s38_s16 }
  0x15   :  { %p1878_p9 = scmp.lt.u32.totalorder %s1874_s19, %s2285_s4 }
  0x17   :  { %p1880_p10 = pnand %p1878_p9, %p1875_p8 }
  0x19   :  { %1883 = shalt.err (!%p1880_p10)
}
  0x1a   :  { %s1884_s24 = scalar_lea.vmem %s39_s16, 1152  ;;  %p1889_p12 = scmp.lt.s32.totalorder %s39_s16, %s39_s16 }
  0x1b   :  { %p1885_p11 = scmp.ne.s32.totalorder %s39_s16, %s1884_s24  ;;  %p1890_p13 = scmp.lt.s32.totalorder %s1884_s24, %s1884_s24 }
  0x1d   :  { %p1891_p0 = por %p1890_p13, %p1889_p12 }
  0x1f   :  { %p1892_p1 = pnand %p1891_p0, %p1885_p11 }
  0x21   :  { %1895 = shalt.err (!%p1892_p1)
}
  0x22   :  { %44 = dma.hbm_to_vmem [thread:$0]  %s2285_s4, 1152, %s39_s16, [#allocation7], %s1925_s11, %s1925_s11, %s1926_s12  }
  0x23   :  { %1918 = dma.done.wait [#allocation4], 1152  }
  0x24   :  { %1919 = vsyncadd [#allocation4], 4294966144 }
  0x25   :  { %1920 = dma.done.wait [#allocation7], 1152  }
  0x26   :  { %1921 = vsyncadd [#allocation7], 4294966144  ;;  %v1928_v0 = vmov 0.0   ;;  %s1929_s26 = smov 16   ;;  %v2010_v1 = vld [vmem:[%s2281_s0] sm:$0xff]  ;;  %v2015_v2 = vld [vmem:[%s2281_s0 + $0x8] sm:$0xff]  ;;  %v57_v8 = vlaneseq }
  0x27   :  { %116 = vrot.lane.b32.xlu1 %v1928_v0, %s1929_s26  ;;  %195 = vmatprep.mubr.f32.mxu0 %v1928_v0  ;;  %v2018_v3 = vmax.f32 %v2010_v1, 0.0  ;;  %s1930_s30 = smov 17   ;;  %v2025_v4 = vmax.f32 %v2015_v2, 0.0  ;;  %s1931_s0 = smov 15   ;;  %v904_v5 = vld [vmem:[%s2283_s2] sm:$0xff]  ;;  %v1937_v7 = vmov 0  }
  0x28   :  { %1022 = vmatprep.mubr.f32.mxu1 %v1928_v0  ;;  %s1932_s8 = smov 1   ;;  %s1933_s9 = smov 127   ;;  %v912_v6 = vld [vmem:[%s2284_s3] sm:$0xff]  ;;  %1850 = vset.pattern.permute.xlu0 %v1937_v7  ;;  %v58_v10 = vand.u32 127, %v57_v8  ;;  %vm122_vm0 = vcmask 130048   ;;  %vm106_vm1 = vcmask 138240  }
  0x29   :  { %118 = vrot.lane.b32.xlu0 %v2018_v3, %s1929_s26  ;;  %s1934_s10 = smov 113   ;;  %s1935_s11 = smov 112   ;;  %1851 = vset.pattern.permute.xlu1 %v1937_v7  ;;  %v115_v19 = vld [vmem:[#allocation3 + $0x8] sm:$0xff]  ;;  %vm127_vm2 = vcmask 64512   ;;  %vm282_vm5 = vcmask 121856   ;;  %v113_v30 = vld [vmem:[#allocation3] sm:$0xff] }
  0x2a   :  { %s1936_s12 = smov 111   ;;  %v59_v11 = vadd.s32 128, %v58_v10  ;;  %v64_v17 = vand.u32 15, %v58_v10  ;;  %vm373_vm8 = vcmask 7168   ;;  %v290_v38 = vld [vmem:[#allocation3 + $0x10] sm:$0xff]  ;;  %vm548_vm9 = vcmask 1039360  }
  0x2b   :  { %102 = vrot.lane.b32.xlu1 %v2018_v3, %s1930_s30  ;;  %v381_v42 = vld [vmem:[#allocation3 + $0x18] sm:$0xff]  ;;  %vm639_vm10 = vcmask 924672   ;;  %v459_v47 = vld [vmem:[#allocation3 + $0x20] sm:$0xff]  ;;  %vm732_vm11 = vcmask 916480   ;;  %v556_v53 = vld [vmem:[#allocation3 + $0x28] sm:$0xff]  ;;  %vm819_vm12 = vcmask 908288  }
  0x2c   :  { %v71_v14 = vand.u32 15, %v59_v11  ;;  %vm2083_vm4 = vcmp.ge.s32.totalorder %v64_v17, 1  ;;  %vm2100_vm7 = vcmp.le.s32.totalorder %v64_v17, 14  ;;  %v647_v58 = vld [vmem:[#allocation3 + $0x30] sm:$0xff]  ;;  %v725_v63 = vld [vmem:[#allocation3 + $0x38] sm:$0xff] }
  0x2d   :  { %120 = vrot.lane.b32.xlu0 %v2025_v4, %s1929_s26 }
  0x2e   :  { %vm2077_vm3 = vcmp.ge.s32.totalorder %v71_v14, 1  ;;  %vm2093_vm6 = vcmp.le.s32.totalorder %v71_v14, 14 }
  0x2f   :  { %100 = vrot.lane.b32.xlu1 %v1928_v0, %s1930_s30 }
  0x31   :  { %104 = vrot.lane.b32.xlu0 %v2025_v4, %s1930_s30 }
  0x33   :  { %280 = vrot.lane.b32.xlu1 %v2025_v4, %s1931_s0 }
  0x35   :  { %278 = vrot.lane.b32.xlu0 %v2018_v3, %s1931_s0 }
  0x37   :  { %369 = vrot.lane.b32.xlu1 %v2018_v3, %s1932_s8 }
  0x39   :  { %276 = vrot.lane.b32.xlu0 %v1928_v0, %s1931_s0 }
  0x3b   :  { %367 = vrot.lane.b32.xlu1 %v1928_v0, %s1932_s8 }
  0x3d   :  { %371 = vrot.lane.b32.xlu0 %v2025_v4, %s1932_s8 }
  0x3f   :  { %546 = vrot.lane.b32.xlu1 %v1928_v0, %s1933_s9 }
  0x41   :  { %544 = vrot.lane.b32.xlu0 %v2025_v4, %s1933_s9 }
  0x43   :  { %635 = vrot.lane.b32.xlu1 %v2025_v4, %s1934_s10 }
  0x45   :  { %542 = vrot.lane.b32.xlu0 %v2018_v3, %s1933_s9 }
  0x47   :  { %633 = vrot.lane.b32.xlu1 %v2018_v3, %s1934_s10 }
  0x49   :  { %637 = vrot.lane.b32.xlu0 %v1928_v0, %s1934_s10 }
  0x4b   :  { %730 = vrot.lane.b32.xlu1 %v1928_v0, %s1935_s11 }
  0x4d   :  { %728 = vrot.lane.b32.xlu0 %v2025_v4, %s1935_s11 }
  0x4f   :  { %815 = vrot.lane.b32.xlu1 %v2025_v4, %s1936_s12 }
  0x51   :  { %726 = vrot.lane.b32.xlu0 %v2018_v3, %s1935_s11 }
  0x53   :  { %813 = vrot.lane.b32.xlu1 %v2018_v3, %s1936_s12 }
  0x55   :  { %817 = vrot.lane.b32.xlu0 %v1928_v0, %s1936_s12 }
  0x57   :  { %915 = vperm.xlu1 %1851, %v912_v6  }
  0x59   :  { %907 = vperm.xlu0 %1850, %v904_v5  }
  0x99   :  { %v117_v9 = vpop.permute.xlu1 %116 }
  0x9b   :  { %v119_v12 = vpop.permute.xlu0 %118 }
  0x9c   :  { %v123_v20 = vsel %vm122_vm0, %v117_v9, %v119_v12 }
  0x9d   :  { %v103_v13 = vpop.permute.xlu1 %102 }
  0x9f   :  { %v121_v15 = vpop.permute.xlu0 %120 }
  0xa0   :  { %v124_v18 = vsel %vm122_vm0, %v119_v12, %v121_v15  ;;  %v1725_v15 = vld [vmem:[%s2286_s5] sm:$0xff]  ;;  %s1938_s5 = smov [#allocation8]  }
  0xa1   :  { %v101_v16 = vpop.permute.xlu1 %100  ;;  %131 = vmatprep.subr.mxu0 %v124_v18 }
  0xa2   :  { %132 = vmatpush1.msra.mxu0 %v123_v20  ;;  %v107_v22 = vsel %vm106_vm1, %v101_v16, %v103_v13  ;;  %v1733_v16 = vld [vmem:[%s2287_s6] sm:$0xff]  ;;  %s1751_s6 = sshll.u32 %s1938_s5, 4  ;;  %s1752_s6 = int_to_ptr.vmem [resolvable:$true] %s1751_s6 }
  0xa3   :  { %1761 = vmatmul.mubr.msk.f32.vlgmr.msra.gmra.mrb[0].mxu0 %vm127_vm2, %v115_v19  ;;  %v105_v23 = vpop.permute.xlu0 %104  ;;  %s1896_s19 = scalar_lea.vmem %s1752_s6, 256  ;;  %p1901_p3 = scmp.lt.s32.totalorder %s1752_s6, %s1752_s6 }
  0xa4   :  { %v108_v26 = vsel %vm106_vm1, %v103_v13, %v105_v23  ;;  %269 = vmatprep.mubr.f32.mxu0 %v1928_v0  ;;  %p1897_p2 = scmp.ne.s32.totalorder %s1752_s6, %s1896_s19  ;;  %p1902_p4 = scmp.lt.s32.totalorder %s1896_s19, %s1896_s19 }
  0xa5   :  { %v281_v25 = vpop.permute.xlu1 %280  ;;  %1762 = vmatprep.subr.msk.mxu0 %vm2077_vm3, %v108_v26 }
  0xa6   :  { %1763 = vmatpush1.msk.msra.mxu0 %vm2083_vm4, %v107_v22  ;;  %v944_v22 = vld [vmem:[#allocation6 + $0x8] sm:$0xff]  ;;  %p1903_p5 = por %p1902_p4, %p1901_p3 }
  0xa7   :  { %v279_v28 = vpop.permute.xlu0 %278 }
  0xa8   :  { %v284_v29 = vsel %vm282_vm5, %v279_v28, %v281_v25  ;;  %p1904_p6 = pnand %p1903_p5, %p1897_p2 }
  0xa9   :  { %v370_v31 = vpop.permute.xlu1 %369  ;;  %1765 = vmatprep.subr.msk.mxu0 %vm2093_vm6, %v284_v29 }
  0xab   :  { %1764 = vmatmul.mubr.msk.f32.vlgmr.msra.gmra.mrb[0].mxu0 %vm127_vm2, %v113_v30  ;;  %v277_v33 = vpop.permute.xlu0 %276 }
  0xac   :  { %v283_v34 = vsel %vm282_vm5, %v277_v33, %v279_v28  ;;  %358 = vmatprep.mubr.f32.mxu0 %v1928_v0  ;;  %v942_v33 = vld [vmem:[#allocation6] sm:$0xff] }
  0xad   :  { %1766 = vmatpush1.msk.msra.mxu0 %vm2100_vm7, %v283_v34  ;;  %v368_v35 = vpop.permute.xlu1 %367 }
  0xae   :  { %v374_v39 = vsel %vm373_vm8, %v368_v35, %v370_v31 }
  0xaf   :  { %v372_v36 = vpop.permute.xlu0 %371 }
  0xb0   :  { %v375_v37 = vsel %vm373_vm8, %v370_v31, %v372_v36 }
  0xb1   :  { %1768 = vmatprep.subr.msk.mxu0 %vm2077_vm3, %v375_v37  ;;  %v547_v41 = vpop.permute.xlu1 %546 }
  0xb3   :  { %1767 = vmatmul.mubr.msk.f32.vlgmr.msra.gmra.mrb[0].mxu0 %vm127_vm2, %v290_v38  ;;  %v545_v40 = vpop.permute.xlu0 %544 }
  0xb4   :  { %1769 = vmatpush1.msk.msra.mxu0 %vm2083_vm4, %v374_v39  ;;  %449 = vmatprep.mubr.f32.mxu0 %v1928_v0  ;;  %v550_v43 = vsel %vm548_vm9, %v545_v40, %v547_v41 }
  0xb5   :  { %463 = vmatprep.subr.mxu0 %v2025_v4  ;;  %v636_v45 = vpop.permute.xlu1 %635  ;;  %v827_v4 = vld [vmem:[#allocation3 + $0x40] sm:$0xff] }
  0xb7   :  { %v543_v44 = vpop.permute.xlu0 %542 }
  0xb8   :  { %v549_v48 = vsel %vm548_vm9, %v543_v44, %v545_v40  ;;  %v1116_v40 = vld [vmem:[#allocation6 + $0x10] sm:$0xff] }
  0xb9   :  { %v634_v50 = vpop.permute.xlu1 %633 }
  0xba   :  { %v640_v54 = vsel %vm639_vm10, %v634_v50, %v636_v45 }
  0xbb   :  { %1770 = vmatmul.mubr.msk.f32.vlgmr.msra.gmra.mrb[0].mxu0 %vm127_vm2, %v381_v42  ;;  %v638_v46 = vpop.permute.xlu0 %637 }
  0xbc   :  { %464 = vmatpush1.msra.mxu0 %v2018_v3  ;;  %527 = vmatprep.mubr.f32.mxu0 %v1928_v0  ;;  %v641_v49 = vsel %vm639_vm10, %v636_v45, %v638_v46  ;;  %v1206_v46 = vld [vmem:[#allocation6 + $0x18] sm:$0xff] }
  0xbd   :  { %1772 = vmatprep.subr.msk.mxu0 %vm2093_vm6, %v550_v43  ;;  %v731_v52 = vpop.permute.xlu1 %730 }
  0xbf   :  { %v729_v51 = vpop.permute.xlu0 %728 }
  0xc0   :  { %v734_v55 = vsel %vm732_vm11, %v729_v51, %v731_v52 }
  0xc1   :  { %v816_v59 = vpop.permute.xlu1 %815 }
  0xc3   :  { %1771 = vmatmul.mubr.msk.f32.vlgmr.msra.gmra.mrb[0].mxu0 %vm127_vm2, %v459_v47  ;;  %v727_v56 = vpop.permute.xlu0 %726 }
  0xc4   :  { %1773 = vmatpush1.msk.msra.mxu0 %vm2100_vm7, %v549_v48  ;;  %624 = vmatprep.mubr.f32.mxu0 %v1928_v0  ;;  %v733_v60 = vsel %vm732_vm11, %v727_v56, %v729_v51  ;;  %v1284_v51 = vld [vmem:[#allocation6 + $0x20] sm:$0xff]  ;;  %v1380_v56 = vld [vmem:[#allocation6 + $0x28] sm:$0xff] }
  0xc5   :  { %1775 = vmatprep.subr.msk.mxu0 %vm2077_vm3, %v641_v49  ;;  %v814_v62 = vpop.permute.xlu1 %813 }
  0xc6   :  { %v820_v3 = vsel %vm819_vm12, %v814_v62, %v816_v59 }
  0xc7   :  { %v818_v57 = vpop.permute.xlu0 %817 }
  0xc8   :  { %v821_v61 = vsel %vm819_vm12, %v816_v59, %v818_v57 }
  0xcb   :  { %1774 = vmatmul.mubr.msk.f32.vlgmr.msra.gmra.mrb[0].mxu0 %vm127_vm2, %v556_v53 }
  0xcc   :  { %1776 = vmatpush1.msk.msra.mxu0 %vm2083_vm4, %v640_v54  ;;  %715 = vmatprep.mubr.f32.mxu0 %v1928_v0 }
  0xcd   :  { %740 = vmatprep.subr.mxu0 %v734_v55 }
  0xd3   :  { %1777 = vmatmul.mubr.msk.f32.vlgmr.msra.gmra.mrb[0].mxu0 %vm127_vm2, %v647_v58 }
  0xd4   :  { %741 = vmatpush1.msra.mxu0 %v733_v60  ;;  %804 = vmatprep.mubr.f32.mxu0 %v1928_v0 }
  0xd5   :  { %1779 = vmatprep.subr.msk.mxu0 %vm2093_vm6, %v821_v61  ;;  %v1470_v61 = vld [vmem:[#allocation6 + $0x30] sm:$0xff] }
  0xd6   :  { %v916_v7 = vpop.permute.xlu1 %915 }
  0xd8   :  { %v908_v5 = vpop.permute.xlu0 %907 }
  0xdb   :  { %1778 = vmatmul.mubr.msk.f32.vlgmr.msra.gmra.mrb[0].mxu0 %vm127_vm2, %v725_v63 }
  0xdc   :  { %1780 = vmatpush1.msk.msra.mxu0 %vm2100_vm7, %v820_v3  ;;  %895 = vmatprep.mubr.f32.mxu0 %v1928_v0 }
  0xe3   :  { %1781 = vmatmul.mubr.msk.f32.vlgmr.msra.gmra.mrb[0].mxu0 %vm127_vm2, %v827_v4  ;;  %v1548_v4 = vld [vmem:[#allocation6 + $0x38] sm:$0xff] }
 0x1b6   :  { %v897_v6 = vpop.f32.mrb[0].mxu0 }
 0x1b7   :  { %v910_v8 = vmul.f32 %v908_v5, %v897_v6  ;;  %v899_v9 = vpop.f32.mrb[1].mxu0  ;;  %v1648_v6 = vld [vmem:[#allocation6 + $0x40] sm:$0xff] }
 0x1b8   :  { %v911_v10 = vmul.f32 %v908_v5, %v899_v9 }
 0x1b9   :  { %v918_v11 = vadd.f32 %v916_v7, %v910_v8 }
 0x1ba   :  { %v919_v12 = vadd.f32 %v916_v7, %v911_v10 }
 0x1bb   :  { %v2150_v13 = vmax.f32 %v918_v11, 0.0 }
 0x1bc   :  { %v2152_v14 = vmax.f32 %v919_v12, 0.0 }
 0x1bd   :  { %947 = vrot.lane.b32.xlu1 %v2150_v13, %s1929_s26 }
 0x1be   :  { %949 = vrot.lane.b32.xlu0 %v2152_v14, %s1929_s26 }
 0x1c1   :  { %945 = vrot.lane.b32.xlu1 %v1928_v0, %s1929_s26 }
 0x1c2   :  { %932 = vrot.lane.b32.xlu0 %v2150_v13, %s1930_s30 }
 0x1c5   :  { %934 = vrot.lane.b32.xlu1 %v2152_v14, %s1930_s30 }
 0x1c6   :  { %930 = vrot.lane.b32.xlu0 %v1928_v0, %s1930_s30 }
 0x1c9   :  { %1105 = vrot.lane.b32.xlu1 %v2150_v13, %s1931_s0 }
 0x1ca   :  { %1107 = vrot.lane.b32.xlu0 %v2152_v14, %s1931_s0 }
 0x1cd   :  { %1103 = vrot.lane.b32.xlu1 %v1928_v0, %s1931_s0 }
 0x1ce   :  { %1195 = vrot.lane.b32.xlu0 %v2150_v13, %s1932_s8 }
 0x1d1   :  { %1197 = vrot.lane.b32.xlu1 %v2152_v14, %s1932_s8 }
 0x1d2   :  { %1193 = vrot.lane.b32.xlu0 %v1928_v0, %s1932_s8 }
 0x1d5   :  { %1369 = vrot.lane.b32.xlu1 %v2152_v14, %s1933_s9 }
 0x1d6   :  { %1371 = vrot.lane.b32.xlu0 %v1928_v0, %s1933_s9 }
 0x1d9   :  { %1367 = vrot.lane.b32.xlu1 %v2150_v13, %s1933_s9 }
 0x1da   :  { %1459 = vrot.lane.b32.xlu0 %v2152_v14, %s1934_s10 }
 0x1dd   :  { %1461 = vrot.lane.b32.xlu1 %v1928_v0, %s1934_s10 }
 0x1de   :  { %1457 = vrot.lane.b32.xlu0 %v2150_v13, %s1934_s10 }
 0x1e1   :  { %1551 = vrot.lane.b32.xlu1 %v2152_v14, %s1935_s11 }
 0x1e2   :  { %1553 = vrot.lane.b32.xlu0 %v1928_v0, %s1935_s11 }
 0x1e5   :  { %1549 = vrot.lane.b32.xlu1 %v2150_v13, %s1935_s11 }
 0x1e6   :  { %1637 = vrot.lane.b32.xlu0 %v2152_v14, %s1936_s12 }
 0x1e9   :  { %1639 = vrot.lane.b32.xlu1 %v1928_v0, %s1936_s12 }
 0x1ea   :  { %1635 = vrot.lane.b32.xlu0 %v2150_v13, %s1936_s12 }
 0x1ed   :  { %1728 = vperm.xlu1 %1851, %v1725_v15  }
 0x1ee   :  { %1736 = vperm.xlu0 %1850, %v1733_v16  }
 0x22f   :  { %v948_v17 = vpop.permute.xlu1 %947 }
 0x230   :  { %v950_v18 = vpop.permute.xlu0 %949 }
 0x231   :  { %v952_v19 = vsel %vm122_vm0, %v948_v17, %v950_v18 }
 0x232   :  { %958 = vmatprep.subr.mxu1 %v952_v19 }
 0x233   :  { %v946_v20 = vpop.permute.xlu1 %945 }
 0x234   :  { %v933_v23 = vpop.permute.xlu0 %932  ;;  %v951_v25 = vsel %vm122_vm0, %v946_v20, %v948_v17 }
 0x235   :  { %959 = vmatpush1.msra.mxu1 %v951_v25 }
 0x236   :  { %1782 = vmatmul.mubr.msk.f32.vlgmr.msra.gmra.mrb[0].mxu1 %vm127_vm2, %v944_v22 }
 0x237   :  { %v935_v26 = vpop.permute.xlu1 %934  ;;  %1096 = vmatprep.mubr.f32.mxu1 %v1928_v0 }
 0x238   :  { %v937_v28 = vsel %vm106_vm1, %v933_v23, %v935_v26  ;;  %v931_v29 = vpop.permute.xlu0 %930 }
 0x239   :  { %v936_v30 = vsel %vm106_vm1, %v931_v29, %v933_v23  ;;  %1783 = vmatprep.subr.msk.mxu1 %vm2077_vm3, %v937_v28 }
 0x23a   :  { %1784 = vmatpush1.msk.msra.mxu1 %vm2083_vm4, %v936_v30 }
 0x23b   :  { %v1106_v31 = vpop.permute.xlu1 %1105 }
 0x23c   :  { %v1108_v34 = vpop.permute.xlu0 %1107 }
 0x23d   :  { %v1110_v35 = vsel %vm282_vm5, %v1106_v31, %v1108_v34 }
 0x23e   :  { %1785 = vmatmul.mubr.msk.f32.vlgmr.msra.gmra.mrb[0].mxu1 %vm127_vm2, %v942_v33  ;;  %1786 = vmatprep.subr.msk.mxu1 %vm2093_vm6, %v1110_v35 }
 0x23f   :  { %v1104_v36 = vpop.permute.xlu1 %1103  ;;  %1184 = vmatprep.mubr.f32.mxu1 %v1928_v0 }
 0x240   :  { %v1109_v37 = vsel %vm282_vm5, %v1104_v36, %v1106_v31  ;;  %v1196_v38 = vpop.permute.xlu0 %1195 }
 0x241   :  { %1787 = vmatpush1.msk.msra.mxu1 %vm2100_vm7, %v1109_v37 }
 0x243   :  { %v1198_v39 = vpop.permute.xlu1 %1197 }
 0x244   :  { %v1200_v41 = vsel %vm373_vm8, %v1196_v38, %v1198_v39  ;;  %v1194_v42 = vpop.permute.xlu0 %1193 }
 0x245   :  { %v1199_v43 = vsel %vm373_vm8, %v1194_v42, %v1196_v38  ;;  %1789 = vmatprep.subr.msk.mxu1 %vm2077_vm3, %v1200_v41 }
 0x246   :  { %1788 = vmatmul.mubr.msk.f32.vlgmr.msra.gmra.mrb[0].mxu1 %vm127_vm2, %v1116_v40 }
 0x247   :  { %1790 = vmatpush1.msk.msra.mxu1 %vm2083_vm4, %v1199_v43  ;;  %v1370_v44 = vpop.permute.xlu1 %1369  ;;  %1274 = vmatprep.mubr.f32.mxu1 %v1928_v0 }
 0x248   :  { %1288 = vmatprep.subr.mxu1 %v2152_v14  ;;  %v1372_v45 = vpop.permute.xlu0 %1371 }
 0x249   :  { %v1374_v48 = vsel %vm548_vm9, %v1370_v44, %v1372_v45 }
 0x24b   :  { %v1368_v47 = vpop.permute.xlu1 %1367 }
 0x24c   :  { %v1460_v49 = vpop.permute.xlu0 %1459  ;;  %v1373_v52 = vsel %vm548_vm9, %v1368_v47, %v1370_v44 }
 0x24e   :  { %1791 = vmatmul.mubr.msk.f32.vlgmr.msra.gmra.mrb[0].mxu1 %vm127_vm2, %v1206_v46 }
 0x24f   :  { %1289 = vmatpush1.msra.mxu1 %v2150_v13  ;;  %1352 = vmatprep.mubr.f32.mxu1 %v1928_v0  ;;  %v1462_v50 = vpop.permute.xlu1 %1461 }
 0x250   :  { %1793 = vmatprep.subr.msk.mxu1 %vm2093_vm6, %v1374_v48  ;;  %v1458_v53 = vpop.permute.xlu0 %1457  ;;  %v1464_v54 = vsel %vm639_vm10, %v1460_v49, %v1462_v50 }
 0x251   :  { %v1463_v58 = vsel %vm639_vm10, %v1458_v53, %v1460_v49 }
 0x253   :  { %v1552_v55 = vpop.permute.xlu1 %1551 }
 0x254   :  { %v1554_v57 = vpop.permute.xlu0 %1553 }
 0x255   :  { %v1556_v60 = vsel %vm732_vm11, %v1552_v55, %v1554_v57 }
 0x256   :  { %1792 = vmatmul.mubr.msk.f32.vlgmr.msra.gmra.mrb[0].mxu1 %vm127_vm2, %v1284_v51 }
 0x257   :  { %1794 = vmatpush1.msk.msra.mxu1 %vm2100_vm7, %v1373_v52  ;;  %1448 = vmatprep.mubr.f32.mxu1 %v1928_v0  ;;  %v1550_v59 = vpop.permute.xlu1 %1549 }
 0x258   :  { %1796 = vmatprep.subr.msk.mxu1 %vm2077_vm3, %v1464_v54  ;;  %v1638_v63 = vpop.permute.xlu0 %1637  ;;  %v1555_v21 = vsel %vm732_vm11, %v1550_v59, %v1552_v55 }
 0x25b   :  { %v1640_v62 = vpop.permute.xlu1 %1639 }
 0x25c   :  { %v1642_v3 = vsel %vm819_vm12, %v1638_v63, %v1640_v62  ;;  %v1636_v24 = vpop.permute.xlu0 %1635 }
 0x25d   :  { %v1641_v5 = vsel %vm819_vm12, %v1636_v24, %v1638_v63 }
 0x25e   :  { %1795 = vmatmul.mubr.msk.f32.vlgmr.msra.gmra.mrb[0].mxu1 %vm127_vm2, %v1380_v56 }
 0x25f   :  { %1797 = vmatpush1.msk.msra.mxu1 %vm2083_vm4, %v1463_v58  ;;  %1538 = vmatprep.mubr.f32.mxu1 %v1928_v0 }
 0x260   :  { %1562 = vmatprep.subr.mxu1 %v1556_v60 }
 0x266   :  { %1798 = vmatmul.mubr.msk.f32.vlgmr.msra.gmra.mrb[0].mxu1 %vm127_vm2, %v1470_v61 }
 0x267   :  { %1563 = vmatpush1.msra.mxu1 %v1555_v21  ;;  %1626 = vmatprep.mubr.f32.mxu1 %v1928_v0 }
 0x268   :  { %1800 = vmatprep.subr.msk.mxu1 %vm2093_vm6, %v1642_v3 }
 0x26c   :  { %v1729_v7 = vpop.permute.xlu1 %1728 }
 0x26d   :  { %v1737_v27 = vpop.permute.xlu0 %1736 }
 0x26e   :  { %1799 = vmatmul.mubr.msk.f32.vlgmr.msra.gmra.mrb[0].mxu1 %vm127_vm2, %v1548_v4 }
 0x26f   :  { %1801 = vmatpush1.msk.msra.mxu1 %vm2100_vm7, %v1641_v5  ;;  %1716 = vmatprep.mubr.f32.mxu1 %v1928_v0 }
 0x276   :  { %1802 = vmatmul.mubr.msk.f32.vlgmr.msra.gmra.mrb[0].mxu1 %vm127_vm2, %v1648_v6 }
 0x349   :  { %v1718_v8 = vpop.f32.mrb[0].mxu1 }
 0x34a   :  { %v1731_v9 = vmul.f32 %v1729_v7, %v1718_v8  ;;  %v1720_v10 = vpop.f32.mrb[1].mxu1 }
 0x34b   :  { %v1732_v11 = vmul.f32 %v1729_v7, %v1720_v10 }
 0x34c   :  { %v1739_v12 = vadd.f32 %v1737_v27, %v1731_v9 }
 0x34d   :  { %v1740_v13 = vadd.f32 %v1737_v27, %v1732_v11 }
 0x34e   :  { %v1741_v14 = vadd.f32 %v1739_v12, %v2010_v1 }
 0x34f   :  { %v1742_v32 = vadd.f32 %v1740_v13, %v2015_v2 }
 0x350   :  { %1743 = vst [vmem:[#allocation8] sm:$0xff] %v1741_v14 }
 0x351   :  { %1744 = vst [vmem:[#allocation8 + $0x8] sm:$0xff] %v1742_v32 }
 0x352   :  { %1907 = shalt.err (!%p1904_p6)
}
 0x353   :  { %s1908_s22 = scalar_lea.hbm %s2288_s7, 256 }
 0x354   :  { %p1909_p7 = scmp.ne.s32.totalorder %s2288_s7, %s1908_s22  ;;  %p1912_p8 = scmp.lt.u32.totalorder %s1908_s22, %s2288_s7 }
 0x356   :  { %p1914_p9 = pnand %p1912_p8, %p1909_p7 }
 0x358   :  { %1917 = shalt.err (!%p1914_p9)
}
 0x359   :  { %1754 = dma.vmem_to_hbm [thread:$0]  %s1752_s6, 256, %s2288_s7, [#allocation5]  }
 0x35a   :  { %1922 = dma.done.wait [#allocation5], 256  }
 0x35b   :  { %1923 = vsyncadd [#allocation5], 4294967040 }
 0x35c   :  { %1758 = vsyncpa [#allocation4], 1 }
 0x35d   :  { %1759 = vsyncpa [#allocation7], 1 }
 0x35e   :  { %1760 = vsyncpa [#allocation5], 1 }

</bundles_post_ra>
